<compile_context>
chip_gen: v5e
topology: v5e:2x2
jax: 0.10.0
libtpu: 0.0.40
codegen_flags: <defaults>
</compile_context>

<pallas_src>
import math

import jax
import jax.numpy as jnp
from jax.experimental import pallas as pl
from jax.experimental.pallas import tpu as pltpu


def _round_up(n, m):
    return ((n + m - 1) // m) * m


def _pad_to(a, shape):
    return jnp.pad(a, [(0, s - d) for d, s in zip(a.shape, shape)])


# --------------------------------------------------------------------------- #
# Kernel: one grid step == TT timesteps for one batch tile.
# --------------------------------------------------------------------------- #
def _snn_rec_seq_kernel(
    x_ref,                        # (TT, BT, Ip)   input block (streamed over time)
    mem0_ref, spk0_ref, b0_ref,   # (BT, Hp)       initial state for this batch tile
    wxx_ref, wxs_ref, bx_ref,     # (Ip,Hp) (Hp,Hp) (1,Hp)   layer1_x split weights
    wmd_ref, wmm_ref, bm_ref,     # (Hp,Hp) (Hp,Hp) (1,Hp)   layer1_tauM split weights
    wad_ref, wab_ref, ba_ref,     # (Hp,Hp) (Hp,Hp) (1,Hp)   layer1_tauAdp split weights
    mem_out_ref, spk_out_ref, bth_out_ref, taum_out_ref, tauadp_out_ref,  # (TT,BT,Hp)
    mem_sc, spk_sc, b_sc,         # (BT, Hp) f32 scratch: state carried across time blocks
):
    ti = pl.program_id(1)         # time-block index (axis 0 is the parallel batch axis)

    # Load the initial recurrent state into scratch at the first time block of
    # each batch tile.
    @pl.when(ti == 0)
    def _():
        mem_sc[...] = mem0_ref[...]
        spk_sc[...] = spk0_ref[...]
        b_sc[...] = b0_ref[...]

    mm_dtype = wxx_ref.dtype      # matmul operand dtype (f32 or bf16)

    mem = mem_sc[...]
    spk = spk_sc[...]
    b = b_sc[...]

    wxx = wxx_ref[...]
    wxs = wxs_ref[...]
    bx = bx_ref[...]
    wmd = wmd_ref[...]
    wmm = wmm_ref[...]
    bm = bm_ref[...]
    wad = wad_ref[...]
    wab = wab_ref[...]
    ba = ba_ref[...]

    TT = x_ref.shape[0]
    # Static unroll over the (small) time tile; state lives in registers and is
    # written back to scratch once at the end of the block.
    for tt in range(TT):
        x = x_ref[tt]                                             # (BT, Ip)

        # dense_x = layer1_x(cat(x_t, spk_t)) via accumulating dots (no concat).
        dense_x = (
            jnp.dot(x.astype(mm_dtype), wxx, preferred_element_type=jnp.float32)
            + jnp.dot(spk.astype(mm_dtype), wxs, preferred_element_type=jnp.float32)
            + bx
        )
        dx = dense_x.astype(mm_dtype)

        # tauM = sigmoid(layer1_tauM(cat(dense_x, mem_t)))
        taum = jax.nn.sigmoid(
            jnp.dot(dx, wmd, preferred_element_type=jnp.float32)
            + jnp.dot(mem.astype(mm_dtype), wmm, preferred_element_type=jnp.float32)
            + bm
        )
        # tauAdp = sigmoid(layer1_tauAdp(cat(dense_x, b_t)))
        tauadp = jax.nn.sigmoid(
            jnp.dot(dx, wad, preferred_element_type=jnp.float32)
            + jnp.dot(b.astype(mm_dtype), wab, preferred_element_type=jnp.float32)
            + ba
        )

        # mem_update_adp (isAdapt=1, dt=1, beta=1.8), f32 epilogue.
        b = tauadp * b + (1.0 - tauadp) * spk
        Bth = 0.1 + 1.8 * b
        mem = mem + (dense_x - mem) * taum                        # mem + d_mem * alpha
        spk = (mem - Bth > 0.0).astype(jnp.float32)               # ActFun_adp fwd: gt(0).float()
        mem = (1.0 - spk) * mem

        # Lane-dense per-timestep stores (each output already a full (BT,Hp) slab).
        mem_out_ref[tt] = mem
        spk_out_ref[tt] = spk
        bth_out_ref[tt] = Bth
        taum_out_ref[tt] = taum
        tauadp_out_ref[tt] = tauadp

    # Carry state to the next time block.
    mem_sc[...] = mem
    spk_sc[...] = spk
    b_sc[...] = b


# --------------------------------------------------------------------------- #
# Wrapper
# --------------------------------------------------------------------------- #
def snn_rec_cell_forward(x, mem0, spk0, b0, kparams, *, time_tile=8, batch_tile=None):
    """Run the cell over a sequence (T, B, I) -- or a single step if x is (B, I).

    Returns (mem, spk, B, tauM, tauAdp), each (T, B, H) (or (B, H) for one step).
    """
    single_step = x.ndim == 2
    if single_step:
        x = x[None]
    T, B, I = x.shape
    H = mem0.shape[-1]

    Ip = kparams["wxx"].shape[0]      # padded input width  (multiple of 128)
    Hp = kparams["wxs"].shape[0]      # padded hidden width (multiple of 128)
    assert I <= Ip and H <= Hp

    f32 = jnp.float32

    # Sublane-pad batch; batch tile is the (optionally parallel) leading grid axis.
    Bp = _round_up(max(B, 1), 8)
    BT = Bp if batch_tile is None else _round_up(min(batch_tile, Bp), 8)
    Bp = _round_up(Bp, BT)

    # Time tiling: TT timesteps per grid step.
    TT = max(1, min(time_tile, T))
    Tp = _round_up(T, TT)

    x_p = _pad_to(x.astype(f32), (Tp, Bp, Ip))
    mem0_p = _pad_to(mem0.astype(f32), (Bp, Hp))
    spk0_p = _pad_to(spk0.astype(f32), (Bp, Hp))
    b0_p = _pad_to(b0.astype(f32), (Bp, Hp))

    grid = (Bp // BT, Tp // TT)

    weight_names = ("wxx", "wxs", "bx", "wmd", "wmm", "bm", "wad", "wab", "ba")
    weights = [kparams[n] for n in weight_names]

    state_spec = pl.BlockSpec((BT, Hp), lambda bi, ti: (bi, 0))
    vmem_full = pl.BlockSpec(memory_space=pltpu.MemorySpace.VMEM)
    out_spec = pl.BlockSpec((TT, BT, Hp), lambda bi, ti: (ti, bi, 0))
    out_shape = jax.ShapeDtypeStruct((Tp, Bp, Hp), f32)

    # Rough VMEM budget: resident weights + double-buffered x / 5 output blocks
    # + state blocks + scratch; 2x headroom, clamped to a safe range for all gens.
    bytes_w = sum(int(w.size) * w.dtype.itemsize for w in weights)
    bytes_io = 4 * 2 * (TT * BT * Ip + 5 * TT * BT * Hp)
    bytes_state = 4 * (2 * 3 + 3) * BT * Hp
    vmem_limit = int(min(max(2 * (bytes_w + bytes_io + bytes_state), 16 * 2**20), 48 * 2**20))

    outs = pl.pallas_call(
        _snn_rec_seq_kernel,
        out_shape=(out_shape,) * 5,
        grid=grid,
        in_specs=[
            # x streamed in (TT, BT, Ip) blocks over the time/batch grid.
            pl.BlockSpec((TT, BT, Ip), lambda bi, ti: (ti, bi, 0)),
            state_spec, state_spec, state_spec,          # initial state (per batch tile)
        ] + [vmem_full] * len(weights),                  # weights resident for all steps
        out_specs=(out_spec,) * 5,
        scratch_shapes=[pltpu.VMEM((BT, Hp), f32)] * 3,
        compiler_params=pltpu.CompilerParams(
            # Batch tiles are independent -> "parallel" (v7x megacore can split);
            # the time axis carries the recurrent state -> "arbitrary"/sequential.
            dimension_semantics=("parallel", "arbitrary"),
            vmem_limit_bytes=vmem_limit,
        ),
    )(x_p, mem0_p, spk0_p, b0_p, *weights)

    # Strip time / batch / lane padding.
    outs = tuple(o[:T, :B, :H] for o in outs)
    if single_step:
        outs = tuple(o[0] for o in outs)
    return outs


# --------------------------------------------------------------------------- #
# Parameters
# --------------------------------------------------------------------------- #
def init_params(key, input_size, hidden_size):
    """Synthetic init matching the PyTorch module's shapes (weights as [in, out])."""
    def xavier(k, fan_in, fan_out):
        bound = math.sqrt(6.0 / (fan_in + fan_out))
        return jax.random.uniform(k, (fan_in, fan_out), jnp.float32, -bound, bound)

    def bias(k, fan_in, fan_out):
        bound = 1.0 / math.sqrt(fan_in)
        return jax.random.uniform(k, (1, fan_out), jnp.float32, -bound, bound)

    ks = jax.random.split(key, 6)
    H, I = hidden_size, input_size
    return {
        "wx": xavier(ks[0], I + H, H),      # layer1_x:      Linear(I+H, H)
        "bx": bias(ks[3], I + H, H),
        "wm": xavier(ks[1], 2 * H, H),      # layer1_tauM:   Linear(2H, H)
        "bm": bias(ks[4], 2 * H, H),
        "wa": xavier(ks[2], 2 * H, H),      # layer1_tauAdp: Linear(2H, H)
        "ba": bias(ks[5], 2 * H, H),
    }


def pack_params(p, input_size, hidden_size, matmul_dtype=jnp.float32):
    """Split/pad weights for the kernel: lane-pad to 128, split the concat
    matmuls into accumulating dots (no zero blocks).  Padded rows/cols are zero,
    so the padded math is exact; biases stay f32."""
    I, H = input_size, hidden_size
    Ip = _round_up(I, 128)
    Hp = _round_up(H, 128)
    f32 = jnp.float32

    wx = p["wx"].astype(f32)   # (I+H, H)
    wm = p["wm"].astype(f32)   # (2H, H)
    wa = p["wa"].astype(f32)   # (2H, H)

    def padw(w, rows):
        return _pad_to(w, (rows, Hp)).astype(matmul_dtype)

    def padb(b):
        return _pad_to(b.astype(f32), (1, Hp))

    return {
        "wxx": padw(wx[:I], Ip),   # x-part of layer1_x
        "wxs": padw(wx[I:], Hp),   # spk-part of layer1_x
        "bx": padb(p["bx"]),
        "wmd": padw(wm[:H], Hp),   # dense_x-part of layer1_tauM
        "wmm": padw(wm[H:], Hp),   # mem-part of layer1_tauM
        "bm": padb(p["bm"]),
        "wad": padw(wa[:H], Hp),   # dense_x-part of layer1_tauAdp
        "wab": padw(wa[H:], Hp),   # b-part of layer1_tauAdp
        "ba": padb(p["ba"]),
    }


# --------------------------------------------------------------------------- #
# Pure-JAX references (module-faithful) for correctness checks
# --------------------------------------------------------------------------- #
def reference_step(x_t, mem, spk, b, p):
    dense_x = jnp.concatenate([x_t, spk], axis=-1) @ p["wx"] + p["bx"]
    taum = jax.nn.sigmoid(jnp.concatenate([dense_x, mem], axis=-1) @ p["wm"] + p["bm"])
    tauadp = jax.nn.sigmoid(jnp.concatenate([dense_x, b], axis=-1) @ p["wa"] + p["ba"])
    b_new = tauadp * b + (1.0 - tauadp) * spk
    Bth = 0.1 + 1.8 * b_new
    mem_new = mem + (dense_x - mem) * taum
    spike = (mem_new - Bth > 0).astype(jnp.float32)
    mem_new = (1.0 - spike) * mem_new
    return mem_new, spike, Bth, taum, tauadp, b_new


def reference_seq(x, mem0, spk0, b0, p):
    def step(carry, x_t):
        mem, spk, b = carry
        mem, spike, Bth, taum, tauadp, b_new = reference_step(x_t, mem, spk, b, p)
        return (mem, spike, b_new), (mem, spike, Bth, taum, tauadp)

    _, ys = jax.lax.scan(step, (mem0, spk0, b0), x)
    return ys


# --------------------------------------------------------------------------- #
if __name__ == "__main__":
    batch, input_size, hidden_size, seq_len = 2, 16, 32, 8

    key = jax.random.PRNGKey(0)
    k_p, k_x, k_m, k_s, k_b = jax.random.split(key, 5)

    raw = init_params(k_p, input_size, hidden_size)
    x_seq = jax.random.normal(k_x, (seq_len, batch, input_size), jnp.float32)
    mem0 = 0.1 * jax.random.normal(k_m, (batch, hidden_size), jnp.float32)
    spk0 = (jax.random.uniform(k_s, (batch, hidden_size)) > 0.5).astype(jnp.float32)
    b0 = 0.1 * jax.random.uniform(k_b, (batch, hidden_size), jnp.float32)

    # ---- f32 matmul path: checked against the module-faithful reference ----
    kp_f32 = pack_params(raw, input_size, hidden_size, jnp.float32)

    # Single step (== SNN_rec_cell.forward semantics).
    outs1 = jax.block_until_ready(snn_rec_cell_forward(x_seq[0], mem0, spk0, b0, kp_f32))
    refs1 = reference_step(x_seq[0], mem0, spk0, b0, raw)[:5]
    for o, r in zip(outs1, refs1):
        assert o.shape == (batch, hidden_size)
        assert jnp.allclose(o, r, atol=1e-4, rtol=1e-4), float(jnp.max(jnp.abs(o - r)))

    # Full sequence in one pallas_call (TT timesteps per grid step; here one step).
    outs_seq = jax.block_until_ready(snn_rec_cell_forward(x_seq, mem0, spk0, b0, kp_f32))
    refs_seq = reference_seq(x_seq, mem0, spk0, b0, raw)
    for o, r in zip(outs_seq, refs_seq):
        assert o.shape == (seq_len, batch, hidden_size)
        assert jnp.allclose(o, r, atol=1e-4, rtol=1e-4), float(jnp.max(jnp.abs(o - r)))

    # ---- bf16 matmul path (perf mode, recommended default on v7x): run + sanity
    # check only.  The spike is a hard >0 threshold, so bf16 matmul rounding can
    # legitimately flip borderline spikes vs. the f32 reference; we verify it
    # compiles, runs, and produces finite outputs.
    kp_bf16 = pack_params(raw, input_size, hidden_size, jnp.bfloat16)
    outs_bf16 = jax.block_until_ready(snn_rec_cell_forward(x_seq, mem0, spk0, b0, kp_bf16))
    for o in outs_bf16:
        assert o.shape == (seq_len, batch, hidden_size)
        assert bool(jnp.all(jnp.isfinite(o)))

    # TODO(synk): ActFun_adp's surrogate-gradient backward (gaussian) is training-only
    # and not implemented here (forward-only kernel).

    print("KERNEL_OK")
</pallas_src>

<mosaic_0001>
module attributes {stable_mosaic.version = 11 : i64} {
  func.func @_snn_rec_seq_kernel(%arg0: i32, %arg1: i32, %arg2: memref<1x8x128xf32, #tpu.memory_space<vmem>>, %arg3: memref<8x128xf32, #tpu.memory_space<vmem>>, %arg4: memref<8x128xf32, #tpu.memory_space<vmem>>, %arg5: memref<8x128xf32, #tpu.memory_space<vmem>>, %arg6: memref<128x128xf32, #tpu.memory_space<vmem>>, %arg7: memref<128x128xf32, #tpu.memory_space<vmem>>, %arg8: memref<1x128xf32, #tpu.memory_space<vmem>>, %arg9: memref<128x128xf32, #tpu.memory_space<vmem>>, %arg10: memref<128x128xf32, #tpu.memory_space<vmem>>, %arg11: memref<1x128xf32, #tpu.memory_space<vmem>>, %arg12: memref<128x128xf32, #tpu.memory_space<vmem>>, %arg13: memref<128x128xf32, #tpu.memory_space<vmem>>, %arg14: memref<1x128xf32, #tpu.memory_space<vmem>>, %arg15: memref<1x8x128xf32, #tpu.memory_space<vmem>>, %arg16: memref<1x8x128xf32, #tpu.memory_space<vmem>>, %arg17: memref<1x8x128xf32, #tpu.memory_space<vmem>>, %arg18: memref<1x8x128xf32, #tpu.memory_space<vmem>>, %arg19: memref<1x8x128xf32, #tpu.memory_space<vmem>>, %arg20: memref<8x128xf32, #tpu.memory_space<vmem>>, %arg21: memref<8x128xf32, #tpu.memory_space<vmem>>, %arg22: memref<8x128xf32, #tpu.memory_space<vmem>>) attributes {dimension_semantics = [#tpu.dimension_semantics<parallel>, #tpu.dimension_semantics<arbitrary>], iteration_bounds = array<i64: 1, 1>, scalar_prefetch = 0 : i64, scratch_operands = 3 : i64, tpu.core_type = #tpu.core_type<tc>, window_params = [{transform_indices = @transform_0, window_bounds = array<i64: 1, 8, 128>}, {transform_indices = @transform_1, window_bounds = array<i64: 8, 128>}, {transform_indices = @transform_2, window_bounds = array<i64: 8, 128>}, {transform_indices = @transform_3, window_bounds = array<i64: 8, 128>}, {pipeline_mode = #tpu.pipeline_mode<synchronous>, transform_indices = @transform_4, window_bounds = array<i64: 128, 128>}, {pipeline_mode = #tpu.pipeline_mode<synchronous>, transform_indices = @transform_5, window_bounds = array<i64: 128, 128>}, {pipeline_mode = #tpu.pipeline_mode<synchronous>, transform_indices = @transform_6, window_bounds = array<i64: 1, 128>}, {pipeline_mode = #tpu.pipeline_mode<synchronous>, transform_indices = @transform_7, window_bounds = array<i64: 128, 128>}, {pipeline_mode = #tpu.pipeline_mode<synchronous>, transform_indices = @transform_8, window_bounds = array<i64: 128, 128>}, {pipeline_mode = #tpu.pipeline_mode<synchronous>, transform_indices = @transform_9, window_bounds = array<i64: 1, 128>}, {pipeline_mode = #tpu.pipeline_mode<synchronous>, transform_indices = @transform_10, window_bounds = array<i64: 128, 128>}, {pipeline_mode = #tpu.pipeline_mode<synchronous>, transform_indices = @transform_11, window_bounds = array<i64: 128, 128>}, {pipeline_mode = #tpu.pipeline_mode<synchronous>, transform_indices = @transform_12, window_bounds = array<i64: 1, 128>}, {transform_indices = @transform_13, window_bounds = array<i64: 1, 8, 128>}, {transform_indices = @transform_14, window_bounds = array<i64: 1, 8, 128>}, {transform_indices = @transform_15, window_bounds = array<i64: 1, 8, 128>}, {transform_indices = @transform_16, window_bounds = array<i64: 1, 8, 128>}, {transform_indices = @transform_17, window_bounds = array<i64: 1, 8, 128>}]} {
    %c0_i32 = arith.constant 0 : i32
    %0 = arith.cmpi eq, %arg1, %c0_i32 : i32
    %1 = arith.extui %0 : i1 to i32
    %c0_i32_0 = arith.constant 0 : i32
    %2 = arith.cmpi ne, %1, %c0_i32_0 : i32
    scf.if %2 {
      %c0_60 = arith.constant 0 : index
      %c0_61 = arith.constant 0 : index
      %80 = vector.load %arg3[%c0_60, %c0_61] : memref<8x128xf32, #tpu.memory_space<vmem>>, vector<8x128xf32>
      %c0_62 = arith.constant 0 : index
      %c0_63 = arith.constant 0 : index
      %81 = vector.load %arg20[%c0_62, %c0_63] : memref<8x128xf32, #tpu.memory_space<vmem>>, vector<8x128xf32>
      tpu.vector_store %arg20[%c0_62, %c0_63], %80 {strides = array<i32>} : memref<8x128xf32, #tpu.memory_space<vmem>>, vector<8x128xf32>,
      %c0_64 = arith.constant 0 : index
      %c0_65 = arith.constant 0 : index
      %82 = vector.load %arg4[%c0_64, %c0_65] : memref<8x128xf32, #tpu.memory_space<vmem>>, vector<8x128xf32>
      %c0_66 = arith.constant 0 : index
      %c0_67 = arith.constant 0 : index
      %83 = vector.load %arg21[%c0_66, %c0_67] : memref<8x128xf32, #tpu.memory_space<vmem>>, vector<8x128xf32>
      tpu.vector_store %arg21[%c0_66, %c0_67], %82 {strides = array<i32>} : memref<8x128xf32, #tpu.memory_space<vmem>>, vector<8x128xf32>,
      %c0_68 = arith.constant 0 : index
      %c0_69 = arith.constant 0 : index
      %84 = vector.load %arg5[%c0_68, %c0_69] : memref<8x128xf32, #tpu.memory_space<vmem>>, vector<8x128xf32>
      %c0_70 = arith.constant 0 : index
      %c0_71 = arith.constant 0 : index
      %85 = vector.load %arg22[%c0_70, %c0_71] : memref<8x128xf32, #tpu.memory_space<vmem>>, vector<8x128xf32>
      tpu.vector_store %arg22[%c0_70, %c0_71], %84 {strides = array<i32>} : memref<8x128xf32, #tpu.memory_space<vmem>>, vector<8x128xf32>,
    } else {
    }
    %c0 = arith.constant 0 : index
    %c0_1 = arith.constant 0 : index
    %3 = vector.load %arg20[%c0, %c0_1] : memref<8x128xf32, #tpu.memory_space<vmem>>, vector<8x128xf32>
    %c0_2 = arith.constant 0 : index
    %c0_3 = arith.constant 0 : index
    %4 = vector.load %arg21[%c0_2, %c0_3] : memref<8x128xf32, #tpu.memory_space<vmem>>, vector<8x128xf32>
    %c0_4 = arith.constant 0 : index
    %c0_5 = arith.constant 0 : index
    %5 = vector.load %arg22[%c0_4, %c0_5] : memref<8x128xf32, #tpu.memory_space<vmem>>, vector<8x128xf32>
    %c0_6 = arith.constant 0 : index
    %c0_7 = arith.constant 0 : index
    %6 = vector.load %arg6[%c0_6, %c0_7] : memref<128x128xf32, #tpu.memory_space<vmem>>, vector<128x128xf32>
    %c0_8 = arith.constant 0 : index
    %c0_9 = arith.constant 0 : index
    %7 = vector.load %arg7[%c0_8, %c0_9] : memref<128x128xf32, #tpu.memory_space<vmem>>, vector<128x128xf32>
    %c0_10 = arith.constant 0 : index
    %c0_11 = arith.constant 0 : index
    %8 = vector.load %arg8[%c0_10, %c0_11] : memref<1x128xf32, #tpu.memory_space<vmem>>, vector<1x128xf32>
    %c0_12 = arith.constant 0 : index
    %c0_13 = arith.constant 0 : index
    %9 = vector.load %arg9[%c0_12, %c0_13] : memref<128x128xf32, #tpu.memory_space<vmem>>, vector<128x128xf32>
    %c0_14 = arith.constant 0 : index
    %c0_15 = arith.constant 0 : index
    %10 = vector.load %arg10[%c0_14, %c0_15] : memref<128x128xf32, #tpu.memory_space<vmem>>, vector<128x128xf32>
    %c0_16 = arith.constant 0 : index
    %c0_17 = arith.constant 0 : index
    %11 = vector.load %arg11[%c0_16, %c0_17] : memref<1x128xf32, #tpu.memory_space<vmem>>, vector<1x128xf32>
    %c0_18 = arith.constant 0 : index
    %c0_19 = arith.constant 0 : index
    %12 = vector.load %arg12[%c0_18, %c0_19] : memref<128x128xf32, #tpu.memory_space<vmem>>, vector<128x128xf32>
    %c0_20 = arith.constant 0 : index
    %c0_21 = arith.constant 0 : index
    %13 = vector.load %arg13[%c0_20, %c0_21] : memref<128x128xf32, #tpu.memory_space<vmem>>, vector<128x128xf32>
    %c0_22 = arith.constant 0 : index
    %c0_23 = arith.constant 0 : index
    %14 = vector.load %arg14[%c0_22, %c0_23] : memref<1x128xf32, #tpu.memory_space<vmem>>, vector<1x128xf32>
    %c0_24 = arith.constant 0 : index
    %c0_25 = arith.constant 0 : index
    %c0_26 = arith.constant 0 : index
    %15 = vector.load %arg2[%c0_24, %c0_25, %c0_26] : memref<1x8x128xf32, #tpu.memory_space<vmem>>, vector<1x8x128xf32>
    %16 = vector.shape_cast %15 : vector<1x8x128xf32> to vector<8x128xf32>
    %cst = arith.constant dense<0.000000e+00> : vector<8x128xf32>
    %17 = tpu.matmul %16, %6, %cst {dimension_numbers = #tpu.dot_dimension_numbers<[1], [0], [0], [1], [0, 0, 1, 1], [], []>} : vector<8x128xf32>, vector<128x128xf32>, vector<8x128xf32> -> vector<8x128xf32>
    %cst_27 = arith.constant dense<0.000000e+00> : vector<8x128xf32>
    %18 = tpu.matmul %4, %7, %cst_27 {dimension_numbers = #tpu.dot_dimension_numbers<[1], [0], [0], [1], [0, 0, 1, 1], [], []>} : vector<8x128xf32>, vector<128x128xf32>, vector<8x128xf32> -> vector<8x128xf32>
    %19 = arith.addf %17, %18 : vector<8x128xf32>
    %20 = vector.broadcast %8 : vector<1x128xf32> to vector<8x128xf32>
    %21 = arith.addf %19, %20 : vector<8x128xf32>
    %cst_28 = arith.constant dense<0.000000e+00> : vector<8x128xf32>
    %22 = tpu.matmul %21, %9, %cst_28 {dimension_numbers = #tpu.dot_dimension_numbers<[1], [0], [0], [1], [0, 0, 1, 1], [], []>} : vector<8x128xf32>, vector<128x128xf32>, vector<8x128xf32> -> vector<8x128xf32>
    %cst_29 = arith.constant dense<0.000000e+00> : vector<8x128xf32>
    %23 = tpu.matmul %3, %10, %cst_29 {dimension_numbers = #tpu.dot_dimension_numbers<[1], [0], [0], [1], [0, 0, 1, 1], [], []>} : vector<8x128xf32>, vector<128x128xf32>, vector<8x128xf32> -> vector<8x128xf32>
    %24 = arith.addf %22, %23 : vector<8x128xf32>
    %25 = vector.broadcast %11 : vector<1x128xf32> to vector<8x128xf32>
    %26 = arith.addf %24, %25 : vector<8x128xf32>
    %27 = arith.negf %26 : vector<8x128xf32>
    %28 = math.exp %27 : vector<8x128xf32>
    %cst_30 = arith.constant 1.000000e+00 : f32
    %29 = vector.broadcast %cst_30 : f32 to vector<8x128xf32>
    %30 = arith.addf %29, %28 : vector<8x128xf32>
    %31 = arith.divf %29, %30 : vector<8x128xf32>
    %cst_31 = arith.constant dense<0.000000e+00> : vector<8x128xf32>
    %32 = tpu.matmul %21, %12, %cst_31 {dimension_numbers = #tpu.dot_dimension_numbers<[1], [0], [0], [1], [0, 0, 1, 1], [], []>} : vector<8x128xf32>, vector<128x128xf32>, vector<8x128xf32> -> vector<8x128xf32>
    %cst_32 = arith.constant dense<0.000000e+00> : vector<8x128xf32>
    %33 = tpu.matmul %5, %13, %cst_32 {dimension_numbers = #tpu.dot_dimension_numbers<[1], [0], [0], [1], [0, 0, 1, 1], [], []>} : vector<8x128xf32>, vector<128x128xf32>, vector<8x128xf32> -> vector<8x128xf32>
    %34 = arith.addf %32, %33 : vector<8x128xf32>
    %35 = vector.broadcast %14 : vector<1x128xf32> to vector<8x128xf32>
    %36 = arith.addf %34, %35 : vector<8x128xf32>
    %37 = arith.negf %36 : vector<8x128xf32>
    %38 = math.exp %37 : vector<8x128xf32>
    %cst_33 = arith.constant 1.000000e+00 : f32
    %39 = vector.broadcast %cst_33 : f32 to vector<8x128xf32>
    %40 = arith.addf %39, %38 : vector<8x128xf32>
    %41 = arith.divf %39, %40 : vector<8x128xf32>
    %42 = arith.mulf %41, %5 : vector<8x128xf32>
    %cst_34 = arith.constant 1.000000e+00 : f32
    %43 = vector.broadcast %cst_34 : f32 to vector<8x128xf32>
    %44 = arith.subf %43, %41 : vector<8x128xf32>
    %45 = arith.mulf %44, %4 : vector<8x128xf32>
    %46 = arith.addf %42, %45 : vector<8x128xf32>
    %cst_35 = arith.constant 1.800000e+00 : f32
    %47 = vector.broadcast %cst_35 : f32 to vector<8x128xf32>
    %48 = arith.mulf %47, %46 : vector<8x128xf32>
    %cst_36 = arith.constant 1.000000e-01 : f32
    %49 = vector.broadcast %cst_36 : f32 to vector<8x128xf32>
    %50 = arith.addf %49, %48 : vector<8x128xf32>
    %51 = arith.subf %21, %3 : vector<8x128xf32>
    %52 = arith.mulf %51, %31 : vector<8x128xf32>
    %53 = arith.addf %3, %52 : vector<8x128xf32>
    %54 = arith.subf %53, %50 : vector<8x128xf32>
    %cst_37 = arith.constant 0.000000e+00 : f32
    %55 = vector.broadcast %cst_37 : f32 to vector<8x128xf32>
    %56 = arith.cmpf ogt, %54, %55 : vector<8x128xf32>
    %57 = arith.extui %56 : vector<8x128xi1> to vector<8x128xi32>
    %58 = arith.sitofp %57 : vector<8x128xi32> to vector<8x128xf32>
    %cst_38 = arith.constant 1.000000e+00 : f32
    %59 = vector.broadcast %cst_38 : f32 to vector<8x128xf32>
    %60 = arith.subf %59, %58 : vector<8x128xf32>
    %61 = arith.mulf %60, %53 : vector<8x128xf32>
    %c0_39 = arith.constant 0 : index
    %c0_40 = arith.constant 0 : index
    %c0_41 = arith.constant 0 : index
    %62 = vector.load %arg15[%c0_39, %c0_40, %c0_41] : memref<1x8x128xf32, #tpu.memory_space<vmem>>, vector<1x8x128xf32>
    %63 = vector.shape_cast %62 : vector<1x8x128xf32> to vector<8x128xf32>
    %64 = vector.shape_cast %61 : vector<8x128xf32> to vector<1x8x128xf32>
    tpu.vector_store %arg15[%c0_39, %c0_40, %c0_41], %64 {strides = array<i32>} : memref<1x8x128xf32, #tpu.memory_space<vmem>>, vector<1x8x128xf32>,
    %c0_42 = arith.constant 0 : index
    %c0_43 = arith.constant 0 : index
    %c0_44 = arith.constant 0 : index
    %65 = vector.load %arg16[%c0_42, %c0_43, %c0_44] : memref<1x8x128xf32, #tpu.memory_space<vmem>>, vector<1x8x128xf32>
    %66 = vector.shape_cast %65 : vector<1x8x128xf32> to vector<8x128xf32>
    %67 = vector.shape_cast %58 : vector<8x128xf32> to vector<1x8x128xf32>
    tpu.vector_store %arg16[%c0_42, %c0_43, %c0_44], %67 {strides = array<i32>} : memref<1x8x128xf32, #tpu.memory_space<vmem>>, vector<1x8x128xf32>,
    %c0_45 = arith.constant 0 : index
    %c0_46 = arith.constant 0 : index
    %c0_47 = arith.constant 0 : index
    %68 = vector.load %arg17[%c0_45, %c0_46, %c0_47] : memref<1x8x128xf32, #tpu.memory_space<vmem>>, vector<1x8x128xf32>
    %69 = vector.shape_cast %68 : vector<1x8x128xf32> to vector<8x128xf32>
    %70 = vector.shape_cast %50 : vector<8x128xf32> to vector<1x8x128xf32>
    tpu.vector_store %arg17[%c0_45, %c0_46, %c0_47], %70 {strides = array<i32>} : memref<1x8x128xf32, #tpu.memory_space<vmem>>, vector<1x8x128xf32>,
    %c0_48 = arith.constant 0 : index
    %c0_49 = arith.constant 0 : index
    %c0_50 = arith.constant 0 : index
    %71 = vector.load %arg18[%c0_48, %c0_49, %c0_50] : memref<1x8x128xf32, #tpu.memory_space<vmem>>, vector<1x8x128xf32>
    %72 = vector.shape_cast %71 : vector<1x8x128xf32> to vector<8x128xf32>
    %73 = vector.shape_cast %31 : vector<8x128xf32> to vector<1x8x128xf32>
    tpu.vector_store %arg18[%c0_48, %c0_49, %c0_50], %73 {strides = array<i32>} : memref<1x8x128xf32, #tpu.memory_space<vmem>>, vector<1x8x128xf32>,
    %c0_51 = arith.constant 0 : index
    %c0_52 = arith.constant 0 : index
    %c0_53 = arith.constant 0 : index
    %74 = vector.load %arg19[%c0_51, %c0_52, %c0_53] : memref<1x8x128xf32, #tpu.memory_space<vmem>>, vector<1x8x128xf32>
    %75 = vector.shape_cast %74 : vector<1x8x128xf32> to vector<8x128xf32>
    %76 = vector.shape_cast %41 : vector<8x128xf32> to vector<1x8x128xf32>
    tpu.vector_store %arg19[%c0_51, %c0_52, %c0_53], %76 {strides = array<i32>} : memref<1x8x128xf32, #tpu.memory_space<vmem>>, vector<1x8x128xf32>,
    %c0_54 = arith.constant 0 : index
    %c0_55 = arith.constant 0 : index
    %77 = vector.load %arg20[%c0_54, %c0_55] : memref<8x128xf32, #tpu.memory_space<vmem>>, vector<8x128xf32>
    tpu.vector_store %arg20[%c0_54, %c0_55], %61 {strides = array<i32>} : memref<8x128xf32, #tpu.memory_space<vmem>>, vector<8x128xf32>,
    %c0_56 = arith.constant 0 : index
    %c0_57 = arith.constant 0 : index
    %78 = vector.load %arg21[%c0_56, %c0_57] : memref<8x128xf32, #tpu.memory_space<vmem>>, vector<8x128xf32>
    tpu.vector_store %arg21[%c0_56, %c0_57], %58 {strides = array<i32>} : memref<8x128xf32, #tpu.memory_space<vmem>>, vector<8x128xf32>,
    %c0_58 = arith.constant 0 : index
    %c0_59 = arith.constant 0 : index
    %79 = vector.load %arg22[%c0_58, %c0_59] : memref<8x128xf32, #tpu.memory_space<vmem>>, vector<8x128xf32>
    tpu.vector_store %arg22[%c0_58, %c0_59], %46 {strides = array<i32>} : memref<8x128xf32, #tpu.memory_space<vmem>>, vector<8x128xf32>,
    return
  }
  func.func @transform_0(%arg0: i32, %arg1: i32) -> (i32, i32, i32) {
    %c0_i32 = arith.constant 0 : i32
    %c0_i32_0 = arith.constant 0 : i32
    return %arg1, %arg0, %c0_i32 : i32, i32, i32
  }
  func.func @transform_1(%arg0: i32, %arg1: i32) -> (i32, i32) {
    %c0_i32 = arith.constant 0 : i32
    %c0_i32_0 = arith.constant 0 : i32
    return %arg0, %c0_i32 : i32, i32
  }
  func.func @transform_2(%arg0: i32, %arg1: i32) -> (i32, i32) {
    %c0_i32 = arith.constant 0 : i32
    %c0_i32_0 = arith.constant 0 : i32
    return %arg0, %c0_i32 : i32, i32
  }
  func.func @transform_3(%arg0: i32, %arg1: i32) -> (i32, i32) {
    %c0_i32 = arith.constant 0 : i32
    %c0_i32_0 = arith.constant 0 : i32
    return %arg0, %c0_i32 : i32, i32
  }
  func.func @transform_4(%arg0: i32, %arg1: i32) -> (i32, i32) {
    %c0_i32 = arith.constant 0 : i32
    %c0_i32_0 = arith.constant 0 : i32
    %c0_i32_1 = arith.constant 0 : i32
    return %c0_i32, %c0_i32_0 : i32, i32
  }
  func.func @transform_5(%arg0: i32, %arg1: i32) -> (i32, i32) {
    %c0_i32 = arith.constant 0 : i32
    %c0_i32_0 = arith.constant 0 : i32
    %c0_i32_1 = arith.constant 0 : i32
    return %c0_i32, %c0_i32_0 : i32, i32
  }
  func.func @transform_6(%arg0: i32, %arg1: i32) -> (i32, i32) {
    %c0_i32 = arith.constant 0 : i32
    %c0_i32_0 = arith.constant 0 : i32
    %c0_i32_1 = arith.constant 0 : i32
    return %c0_i32, %c0_i32_0 : i32, i32
  }
  func.func @transform_7(%arg0: i32, %arg1: i32) -> (i32, i32) {
    %c0_i32 = arith.constant 0 : i32
    %c0_i32_0 = arith.constant 0 : i32
    %c0_i32_1 = arith.constant 0 : i32
    return %c0_i32, %c0_i32_0 : i32, i32
  }
  func.func @transform_8(%arg0: i32, %arg1: i32) -> (i32, i32) {
    %c0_i32 = arith.constant 0 : i32
    %c0_i32_0 = arith.constant 0 : i32
    %c0_i32_1 = arith.constant 0 : i32
    return %c0_i32, %c0_i32_0 : i32, i32
  }
  func.func @transform_9(%arg0: i32, %arg1: i32) -> (i32, i32) {
    %c0_i32 = arith.constant 0 : i32
    %c0_i32_0 = arith.constant 0 : i32
    %c0_i32_1 = arith.constant 0 : i32
    return %c0_i32, %c0_i32_0 : i32, i32
  }
  func.func @transform_10(%arg0: i32, %arg1: i32) -> (i32, i32) {
    %c0_i32 = arith.constant 0 : i32
    %c0_i32_0 = arith.constant 0 : i32
    %c0_i32_1 = arith.constant 0 : i32
    return %c0_i32, %c0_i32_0 : i32, i32
  }
  func.func @transform_11(%arg0: i32, %arg1: i32) -> (i32, i32) {
    %c0_i32 = arith.constant 0 : i32
    %c0_i32_0 = arith.constant 0 : i32
    %c0_i32_1 = arith.constant 0 : i32
    return %c0_i32, %c0_i32_0 : i32, i32
  }
  func.func @transform_12(%arg0: i32, %arg1: i32) -> (i32, i32) {
    %c0_i32 = arith.constant 0 : i32
    %c0_i32_0 = arith.constant 0 : i32
    %c0_i32_1 = arith.constant 0 : i32
    return %c0_i32, %c0_i32_0 : i32, i32
  }
  func.func @transform_13(%arg0: i32, %arg1: i32) -> (i32, i32, i32) {
    %c0_i32 = arith.constant 0 : i32
    %c0_i32_0 = arith.constant 0 : i32
    return %arg1, %arg0, %c0_i32 : i32, i32, i32
  }
  func.func @transform_14(%arg0: i32, %arg1: i32) -> (i32, i32, i32) {
    %c0_i32 = arith.constant 0 : i32
    %c0_i32_0 = arith.constant 0 : i32
    return %arg1, %arg0, %c0_i32 : i32, i32, i32
  }
  func.func @transform_15(%arg0: i32, %arg1: i32) -> (i32, i32, i32) {
    %c0_i32 = arith.constant 0 : i32
    %c0_i32_0 = arith.constant 0 : i32
    return %arg1, %arg0, %c0_i32 : i32, i32, i32
  }
  func.func @transform_16(%arg0: i32, %arg1: i32) -> (i32, i32, i32) {
    %c0_i32 = arith.constant 0 : i32
    %c0_i32_0 = arith.constant 0 : i32
    return %arg1, %arg0, %c0_i32 : i32, i32, i32
  }
  func.func @transform_17(%arg0: i32, %arg1: i32) -> (i32, i32, i32) {
    %c0_i32 = arith.constant 0 : i32
    %c0_i32_0 = arith.constant 0 : i32
    return %arg1, %arg0, %c0_i32 : i32, i32, i32
  }
}

</mosaic_0001>

<bundles_post_ra>
// kernel: tpu_custom_call.1
= control target key start
LH: loop header
LB: loop body
LE: loop exit
PB: predicated region body
PF: predicated region fallthrough
CT: control target
= control target key end

     0   :  { %s1194_s0 = inlined_call_operand.hbm [shape: f32[1,8,128], index: 0, kind: input, shape index: {}]   ;;  %s1195_s1 = inlined_call_operand.hbm [shape: f32[8,128], index: 1, kind: input, shape index: {}]   ;;  %s1196_s2 = inlined_call_operand.hbm [shape: f32[8,128], index: 2, kind: input, shape index: {}]   ;;  %s1197_s3 = inlined_call_operand.hbm [shape: f32[8,128], index: 3, kind: input, shape index: {}]   ;;  %s1198_s4 = inlined_call_operand.hbm [shape: f32[128,128], index: 4, kind: input, shape index: {}]   ;;  %s1199_s5 = inlined_call_operand.hbm [shape: f32[128,128], index: 5, kind: input, shape index: {}]   ;;  %s1200_s6 = inlined_call_operand.vmem [shape: f32[1,128], index: 6, kind: input, shape index: {}]   ;;  %s1201_s7 = inlined_call_operand.hbm [shape: f32[128,128], index: 7, kind: input, shape index: {}]   ;;  %s1202_s8 = inlined_call_operand.hbm [shape: f32[128,128], index: 8, kind: input, shape index: {}]   ;;  %s1203_s9 = inlined_call_operand.vmem [shape: f32[1,128], index: 9, kind: input, shape index: {}]   ;;  %s1204_s10 = inlined_call_operand.hbm [shape: f32[128,128], index: 10, kind: input, shape index: {}]   ;;  %s1205_s11 = inlined_call_operand.hbm [shape: f32[128,128], index: 11, kind: input, shape index: {}]   ;;  %s1206_s12 = inlined_call_operand.vmem [shape: f32[1,128], index: 12, kind: input, shape index: {}]   ;;  %s1207_s13 = inlined_call_operand.hbm [shape: f32[1,8,128], index: 13, kind: output, shape index: {0}]   ;;  %s1208_s14 = inlined_call_operand.hbm [shape: f32[1,8,128], index: 14, kind: output, shape index: {1}]   ;;  %s1209_s15 = inlined_call_operand.hbm [shape: f32[1,8,128], index: 15, kind: output, shape index: {2}]   ;;  %s1210_s16 = inlined_call_operand.hbm [shape: f32[1,8,128], index: 16, kind: output, shape index: {3}]   ;;  %s1211_s17 = inlined_call_operand.hbm [shape: f32[1,8,128], index: 17, kind: output, shape index: {4}]  }
   0x1   :  { %1212 = sst [smem:[#allocation38_spill]] %s1194_s0 }
   0x2   :  { %1213 = sst [smem:[#allocation39_spill]] %s1195_s1 }
   0x3   :  { %23 = vsyncpa [#allocation6], 0 }
   0x4   :  { %24 = vsyncpa [#allocation9], 0 }
   0x5   :  { %25 = vsyncpa [#allocation12], 0 }
   0x6   :  { %26 = vsyncpa [#allocation15], 0 }
   0x7   :  { %27 = vsyncpa [#allocation18], 0 }
   0x8   :  { %28 = vsyncpa [#allocation21], 0 }
   0x9   :  { %29 = vsyncpa [#allocation7], 0 }
   0xa   :  { %30 = vsyncpa [#allocation24], 0  ;;  %s1214_s26 = sld [smem:[#allocation39_spill]] }
  0x10   :  { %s48_s27 = sshll.u32 %s1214_s26, 4  ;;  %s49_s27 = int_to_ptr.hbm [resolvable:$true] %s48_s27 }
  0x11   :  { %31 = vsyncpa [#allocation27], 0  ;;  %s1000_s28 = smov [#allocation8]   ;;  %s70_s18 = sshll.u32 %s1197_s3, 4  ;;  %s71_s18 = int_to_ptr.hbm [resolvable:$true] %s70_s18 }
  0x12   :  { %s50_s29 = sshll.u32 %s1000_s28, 4  ;;  %s1001_s19 = smov [#allocation11]   ;;  %s51_s29 = int_to_ptr.vmem [resolvable:$true] %s50_s29 }
  0x13   :  { %53 = dma.hbm_to_vmem [thread:$0]  %s49_s27, 128, %s51_s29, [#allocation9]  }
  0x14   :  { %s72_s1 = sshll.u32 %s1001_s19, 4  ;;  %s93_s22 = sshll.u32 %s1199_s5, 4  ;;  %s73_s1 = int_to_ptr.vmem [resolvable:$true] %s72_s1  ;;  %s94_s22 = int_to_ptr.hbm [resolvable:$true] %s93_s22 }
  0x15   :  { %75 = dma.hbm_to_vmem [thread:$0]  %s71_s18, 128, %s73_s1, [#allocation12]  }
  0x16   :  { %s1002_s23 = smov [#allocation14]   ;;  %s121_s28 = sshll.u32 %s1202_s8, 4  ;;  %s122_s28 = int_to_ptr.hbm [resolvable:$true] %s121_s28 }
  0x17   :  { %s95_s24 = sshll.u32 %s1002_s23, 4  ;;  %s1003_s0 = smov 128   ;;  %s96_s24 = int_to_ptr.vmem [resolvable:$true] %s95_s24 }
  0x18   :  { %s1004_s3 = smov 8   ;;  %s1005_s27 = smov [#allocation17]  }
  0x19   :  { %101 = dma.hbm_to_vmem [thread:$0]  %s94_s22, 2048, %s96_s24, [#allocation15], %s1003_s0, %s1003_s0, %s1004_s3  }
  0x1a   :  { %s123_s29 = sshll.u32 %s1005_s27, 4  ;;  %s1215_s5 = sld [smem:[#allocation38_spill]]  ;;  %s124_s29 = int_to_ptr.vmem [resolvable:$true] %s123_s29 }
  0x1b   :  { %129 = dma.hbm_to_vmem [thread:$0]  %s122_s28, 2048, %s124_s29, [#allocation18], %s1003_s0, %s1003_s0, %s1004_s3  }
  0x1c   :  { %s59_s20 = sshll.u32 %s1196_s2, 4  ;;  %s1006_s21 = smov [#allocation5]   ;;  %s60_s20 = int_to_ptr.hbm [resolvable:$true] %s59_s20 }
  0x1d   :  { %s39_s23 = sshll.u32 %s1006_s21, 4  ;;  %s1007_s22 = smov [#allocation10]   ;;  %s40_s23 = int_to_ptr.vmem [resolvable:$true] %s39_s23 }
  0x1e   :  { %s61_s24 = sshll.u32 %s1007_s22, 4  ;;  %s80_s27 = sshll.u32 %s1198_s4, 4  ;;  %s62_s24 = int_to_ptr.vmem [resolvable:$true] %s61_s24  ;;  %s81_s27 = int_to_ptr.hbm [resolvable:$true] %s80_s27 }
  0x1f   :  { %64 = dma.hbm_to_vmem [thread:$0]  %s60_s20, 128, %s62_s24, [#allocation9]  }
  0x20   :  { %s37_s19 = sshll.u32 %s1215_s5, 4  ;;  %s108_s29 = sshll.u32 %s1201_s7, 4  ;;  %s38_s19 = int_to_ptr.hbm [resolvable:$true] %s37_s19  ;;  %s109_s29 = int_to_ptr.hbm [resolvable:$true] %s108_s29 }
  0x21   :  { %42 = dma.hbm_to_vmem [thread:$0]  %s38_s19, 128, %s40_s23, [#allocation6]  }
  0x22   :  { %s1008_s18 = smov [#allocation13]   ;;  %s1009_s5 = smov [#allocation16]  }
  0x23   :  { %s82_s2 = sshll.u32 %s1008_s18, 4  ;;  %s110_s19 = sshll.u32 %s1009_s5, 4  ;;  %s83_s2 = int_to_ptr.vmem [resolvable:$true] %s82_s2  ;;  %s111_s19 = int_to_ptr.vmem [resolvable:$true] %s110_s19 }
  0x24   :  { %88 = dma.hbm_to_vmem [thread:$0]  %s81_s27, 2048, %s83_s2, [#allocation12], %s1003_s0, %s1003_s0, %s1004_s3  }
  0x25   :  { %s136_s4 = sshll.u32 %s1204_s10, 4  ;;  %s149_s21 = sshll.u32 %s1205_s11, 4  ;;  %s137_s4 = int_to_ptr.hbm [resolvable:$true] %s136_s4  ;;  %s150_s21 = int_to_ptr.hbm [resolvable:$true] %s149_s21 }
  0x26   :  { %116 = dma.hbm_to_vmem [thread:$0]  %s109_s29, 2048, %s111_s19, [#allocation15], %s1003_s0, %s1003_s0, %s1004_s3  }
  0x27   :  { %s1010_s23 = smov [#allocation19]   ;;  %s1011_s24 = smov [#allocation20]  }
  0x28   :  { %s138_s22 = sshll.u32 %s1010_s23, 4  ;;  %s151_s10 = sshll.u32 %s1011_s24, 4  ;;  %s139_s22 = int_to_ptr.vmem [resolvable:$true] %s138_s22  ;;  %s152_s10 = int_to_ptr.vmem [resolvable:$true] %s151_s10 }
  0x29   :  { %144 = dma.hbm_to_vmem [thread:$0]  %s137_s4, 2048, %s139_s22, [#allocation18], %s1003_s0, %s1003_s0, %s1004_s3  }
  0x2a   :  { %157 = dma.hbm_to_vmem [thread:$0]  %s150_s21, 2048, %s152_s10, [#allocation21], %s1003_s0, %s1003_s0, %s1004_s3  }
  0x2b   :  { %982 = dma.done.wait [#allocation6], 128  }
  0x2c   :  { %983 = vsyncadd [#allocation6], 4294967168 }
  0x2d   :  { %984 = dma.done.wait [#allocation9], 256  }
  0x2e   :  { %985 = vsyncadd [#allocation9], 4294967040 }
  0x2f   :  { %986 = dma.done.wait [#allocation12], 2176  }
  0x30   :  { %987 = vsyncadd [#allocation12], 4294965120 }
  0x31   :  { %988 = dma.done.wait [#allocation15], 4096  }
  0x32   :  { %989 = vsyncadd [#allocation15], 4294963200 }
  0x33   :  { %990 = dma.done.wait [#allocation18], 4096  }
  0x34   :  { %991 = vsyncadd [#allocation18], 4294963200 }
  0x35   :  { %992 = dma.done.wait [#allocation21], 2048  }
  0x36   :  { %993 = vsyncadd [#allocation21], 4294965248  ;;  %v244_v0 = vld [vmem:[#allocation14 + $0x78] sm:$0xff]  ;;  %v243_v2 = vld [vmem:[#allocation14 + $0x70] sm:$0xff]  ;;  %s546_s28 = sshll.u32 %s1210_s16, 4  ;;  %s1013_s29 = smov [#allocation28]   ;;  %s547_s28 = int_to_ptr.hbm [resolvable:$true] %s546_s28 }
  0x37   :  { %v228_v1 = vld [vmem:[#allocation13 + $0x78] sm:$0xff]  ;;  %313 = vmatpush.msra.mxu0 %v244_v0  ;;  %v227_v3 = vld [vmem:[#allocation13 + $0x70] sm:$0xff]  ;;  %v242_v4 = vld [vmem:[#allocation14 + $0x68] sm:$0xff]  ;;  %s555_s18 = sshll.u32 %s1013_s29, 4  ;;  %s557_s19 = sshll.u32 %s1211_s17, 4  ;;  %s556_s18 = int_to_ptr.vmem [resolvable:$true] %s555_s18  ;;  %s558_s19 = int_to_ptr.hbm [resolvable:$true] %s557_s19 }
  0x38   :  { %333 = vmatpush.msra.mxu1 %v228_v1  ;;  %v226_v5 = vld [vmem:[#allocation13 + $0x68] sm:$0xff]  ;;  %v241_v6 = vld [vmem:[#allocation14 + $0x60] sm:$0xff]  ;;  %v240_v8 = vld [vmem:[#allocation14 + $0x58] sm:$0xff]  ;;  %s1014_s16 = smov [#allocation23]   ;;  %s524_s4 = sshll.u32 %s1208_s14, 4  ;;  %s525_s4 = int_to_ptr.hbm [resolvable:$true] %s524_s4 }
  0x39   :  { %314 = vmatpush.msra.mxu0 %v243_v2  ;;  %v225_v7 = vld [vmem:[#allocation13 + $0x60] sm:$0xff]  ;;  %v224_v9 = vld [vmem:[#allocation13 + $0x58] sm:$0xff]  ;;  %v239_v10 = vld [vmem:[#allocation14 + $0x50] sm:$0xff]  ;;  %s522_s17 = sshll.u32 %s1014_s16, 4  ;;  %s1015_s7 = smov [#allocation25]   ;;  %s523_s17 = int_to_ptr.vmem [resolvable:$true] %s522_s17 }
  0x3a   :  { %334 = vmatpush.msra.mxu1 %v227_v3  ;;  %v223_v11 = vld [vmem:[#allocation13 + $0x50] sm:$0xff]  ;;  %v238_v12 = vld [vmem:[#allocation14 + $0x48] sm:$0xff]  ;;  %v277_v14 = vld [vmem:[#allocation17 + $0x78] sm:$0xff]  ;;  %s533_s20 = sshll.u32 %s1015_s7, 4  ;;  %s535_s22 = sshll.u32 %s1209_s15, 4  ;;  %s534_s20 = int_to_ptr.vmem [resolvable:$true] %s533_s20  ;;  %s536_s22 = int_to_ptr.hbm [resolvable:$true] %s535_s22 }
  0x3b   :  { %315 = vmatpush.msra.mxu0 %v242_v4  ;;  %v222_v13 = vld [vmem:[#allocation13 + $0x48] sm:$0xff]  ;;  %v261_v15 = vld [vmem:[#allocation16 + $0x78] sm:$0xff]  ;;  %v237_v16 = vld [vmem:[#allocation14 + $0x40] sm:$0xff]  ;;  %357 = vmatpush.msra.mxu2 %v277_v14  ;;  %s1016_s24 = smov [#allocation22]   ;;  %s513_s3 = sshll.u32 %s1207_s13, 4  ;;  %s514_s3 = int_to_ptr.hbm [resolvable:$true] %s513_s3 }
  0x3c   :  { %335 = vmatpush.msra.mxu1 %v226_v5  ;;  %v221_v17 = vld [vmem:[#allocation13 + $0x40] sm:$0xff]  ;;  %377 = vmatpush.msra.mxu3 %v261_v15  ;;  %v276_v18 = vld [vmem:[#allocation17 + $0x70] sm:$0xff]  ;;  %v236_v19 = vld [vmem:[#allocation14 + $0x38] sm:$0xff]  ;;  %s511_s10 = sshll.u32 %s1016_s24, 4  ;;  %s512_s10 = int_to_ptr.vmem [resolvable:$true] %s511_s10 }
  0x3d   :  { %316 = vmatpush.msra.mxu0 %v241_v6  ;;  %v260_v20 = vld [vmem:[#allocation16 + $0x70] sm:$0xff]  ;;  %v220_v21 = vld [vmem:[#allocation13 + $0x38] sm:$0xff]  ;;  %358 = vmatpush.msra.mxu2 %v276_v18  ;;  %v275_v22 = vld [vmem:[#allocation17 + $0x68] sm:$0xff] }
  0x3e   :  { %336 = vmatpush.msra.mxu1 %v225_v7  ;;  %378 = vmatpush.msra.mxu3 %v260_v20  ;;  %v259_v23 = vld [vmem:[#allocation16 + $0x68] sm:$0xff]  ;;  %v274_v24 = vld [vmem:[#allocation17 + $0x60] sm:$0xff]  ;;  %v235_v26 = vld [vmem:[#allocation14 + $0x30] sm:$0xff] }
  0x3f   :  { %317 = vmatpush.msra.mxu0 %v240_v8  ;;  %v258_v25 = vld [vmem:[#allocation16 + $0x60] sm:$0xff]  ;;  %v219_v27 = vld [vmem:[#allocation13 + $0x30] sm:$0xff]  ;;  %359 = vmatpush.msra.mxu2 %v275_v22  ;;  %v273_v28 = vld [vmem:[#allocation17 + $0x58] sm:$0xff] }
  0x40   :  { %337 = vmatpush.msra.mxu1 %v224_v9  ;;  %379 = vmatpush.msra.mxu3 %v259_v23  ;;  %v257_v29 = vld [vmem:[#allocation16 + $0x58] sm:$0xff]  ;;  %v234_v30 = vld [vmem:[#allocation14 + $0x28] sm:$0xff]  ;;  %v272_v32 = vld [vmem:[#allocation17 + $0x50] sm:$0xff] }
  0x41   :  { %318 = vmatpush.msra.mxu0 %v239_v10  ;;  %v218_v31 = vld [vmem:[#allocation13 + $0x28] sm:$0xff]  ;;  %360 = vmatpush.msra.mxu2 %v274_v24  ;;  %v256_v33 = vld [vmem:[#allocation16 + $0x50] sm:$0xff]  ;;  %v233_v34 = vld [vmem:[#allocation14 + $0x20] sm:$0xff] }
  0x42   :  { %338 = vmatpush.msra.mxu1 %v223_v11  ;;  %380 = vmatpush.msra.mxu3 %v258_v25  ;;  %v217_v35 = vld [vmem:[#allocation13 + $0x20] sm:$0xff]  ;;  %v271_v36 = vld [vmem:[#allocation17 + $0x48] sm:$0xff]  ;;  %v232_v38 = vld [vmem:[#allocation14 + $0x18] sm:$0xff] }
  0x43   :  { %319 = vmatpush.msra.mxu0 %v238_v12  ;;  %361 = vmatpush.msra.mxu2 %v273_v28  ;;  %v255_v37 = vld [vmem:[#allocation16 + $0x48] sm:$0xff]  ;;  %v216_v39 = vld [vmem:[#allocation13 + $0x18] sm:$0xff]  ;;  %v270_v40 = vld [vmem:[#allocation17 + $0x40] sm:$0xff] }
  0x44   :  { %339 = vmatpush.msra.mxu1 %v222_v13  ;;  %381 = vmatpush.msra.mxu3 %v257_v29  ;;  %v254_v41 = vld [vmem:[#allocation16 + $0x40] sm:$0xff]  ;;  %v231_v42 = vld [vmem:[#allocation14 + $0x10] sm:$0xff]  ;;  %v269_v44 = vld [vmem:[#allocation17 + $0x38] sm:$0xff] }
  0x45   :  { %320 = vmatpush.msra.mxu0 %v237_v16  ;;  %362 = vmatpush.msra.mxu2 %v272_v32  ;;  %v215_v43 = vld [vmem:[#allocation13 + $0x10] sm:$0xff]  ;;  %v253_v45 = vld [vmem:[#allocation16 + $0x38] sm:$0xff]  ;;  %v230_v46 = vld [vmem:[#allocation14 + $0x8] sm:$0xff] }
  0x46   :  { %340 = vmatpush.msra.mxu1 %v221_v17  ;;  %382 = vmatpush.msra.mxu3 %v256_v33  ;;  %v214_v47 = vld [vmem:[#allocation13 + $0x8] sm:$0xff]  ;;  %v229_v48 = vld [vmem:[#allocation14] sm:$0xff]  ;;  %v268_v49 = vld [vmem:[#allocation17 + $0x30] sm:$0xff] }
  0x47   :  { %321 = vmatpush.msra.mxu0 %v236_v19  ;;  %363 = vmatpush.msra.mxu2 %v271_v36  ;;  %v252_v50 = vld [vmem:[#allocation16 + $0x30] sm:$0xff]  ;;  %v213_v51 = vld [vmem:[#allocation13] sm:$0xff]  ;;  %v310_v54 = vld [vmem:[#allocation20 + $0x78] sm:$0xff] }
  0x48   :  { %341 = vmatpush.msra.mxu1 %v220_v21  ;;  %383 = vmatpush.msra.mxu3 %v255_v37  ;;  %v1156_v52 = vld [vmem:[#allocation10] sm:$0xff]  ;;  %v312_v53 = vld [vmem:[#allocation5] sm:$0xff]  ;;  %v294_v55 = vld [vmem:[#allocation19 + $0x78] sm:$0xff] }
  0x49   :  { %322 = vmatpush.msra.mxu0 %v235_v26  ;;  %364 = vmatpush.msra.mxu2 %v270_v40  ;;  %v267_v56 = vld [vmem:[#allocation17 + $0x28] sm:$0xff]  ;;  %v309_v58 = vld [vmem:[#allocation20 + $0x70] sm:$0xff]  ;;  %v266_v60 = vld [vmem:[#allocation17 + $0x20] sm:$0xff] }
  0x4a   :  { %342 = vmatpush.msra.mxu1 %v219_v27  ;;  %384 = vmatpush.msra.mxu3 %v254_v41  ;;  %v251_v57 = vld [vmem:[#allocation16 + $0x28] sm:$0xff]  ;;  %v293_v59 = vld [vmem:[#allocation19 + $0x70] sm:$0xff]  ;;  %v250_v61 = vld [vmem:[#allocation16 + $0x20] sm:$0xff] }
  0x4b   :  { %323 = vmatpush.msra.mxu0 %v234_v30  ;;  %365 = vmatpush.msra.mxu2 %v269_v44  ;;  %v308_v62 = vld [vmem:[#allocation20 + $0x68] sm:$0xff]  ;;  %v265_v0 = vld [vmem:[#allocation17 + $0x18] sm:$0xff]  ;;  %v307_v2 = vld [vmem:[#allocation20 + $0x60] sm:$0xff] }
  0x4c   :  { %343 = vmatpush.msra.mxu1 %v218_v31  ;;  %385 = vmatpush.msra.mxu3 %v253_v45  ;;  %v292_v63 = vld [vmem:[#allocation19 + $0x68] sm:$0xff]  ;;  %v249_v1 = vld [vmem:[#allocation16 + $0x18] sm:$0xff]  ;;  %v291_v3 = vld [vmem:[#allocation19 + $0x60] sm:$0xff] }
  0x4d   :  { %324 = vmatpush.msra.mxu0 %v233_v34  ;;  %366 = vmatpush.msra.mxu2 %v268_v49  ;;  %v306_v4 = vld [vmem:[#allocation20 + $0x58] sm:$0xff]  ;;  %v305_v6 = vld [vmem:[#allocation20 + $0x50] sm:$0xff]  ;;  %v304_v8 = vld [vmem:[#allocation20 + $0x48] sm:$0xff] }
  0x4e   :  { %344 = vmatpush.msra.mxu1 %v217_v35  ;;  %386 = vmatpush.msra.mxu3 %v252_v50  ;;  %v290_v5 = vld [vmem:[#allocation19 + $0x58] sm:$0xff]  ;;  %v289_v7 = vld [vmem:[#allocation19 + $0x50] sm:$0xff]  ;;  %v288_v9 = vld [vmem:[#allocation19 + $0x48] sm:$0xff] }
  0x4f   :  { %325 = vmatpush.msra.mxu0 %v232_v38  ;;  %367 = vmatpush.msra.mxu2 %v267_v56  ;;  %v303_v10 = vld [vmem:[#allocation20 + $0x40] sm:$0xff]  ;;  %v302_v12 = vld [vmem:[#allocation20 + $0x38] sm:$0xff]  ;;  %v301_v14 = vld [vmem:[#allocation20 + $0x30] sm:$0xff] }
  0x50   :  { %345 = vmatpush.msra.mxu1 %v216_v39  ;;  %387 = vmatpush.msra.mxu3 %v251_v57  ;;  %v287_v11 = vld [vmem:[#allocation19 + $0x40] sm:$0xff]  ;;  %v286_v13 = vld [vmem:[#allocation19 + $0x38] sm:$0xff]  ;;  %v285_v15 = vld [vmem:[#allocation19 + $0x30] sm:$0xff] }
  0x51   :  { %326 = vmatpush.msra.mxu0 %v231_v42  ;;  %368 = vmatpush.msra.mxu2 %v266_v60  ;;  %v300_v16 = vld [vmem:[#allocation20 + $0x28] sm:$0xff]  ;;  %v299_v18 = vld [vmem:[#allocation20 + $0x20] sm:$0xff]  ;;  %v298_v20 = vld [vmem:[#allocation20 + $0x18] sm:$0xff] }
  0x52   :  { %346 = vmatpush.msra.mxu1 %v215_v43  ;;  %388 = vmatpush.msra.mxu3 %v250_v61  ;;  %v284_v17 = vld [vmem:[#allocation19 + $0x28] sm:$0xff]  ;;  %v283_v19 = vld [vmem:[#allocation19 + $0x20] sm:$0xff]  ;;  %v282_v21 = vld [vmem:[#allocation19 + $0x18] sm:$0xff] }
  0x53   :  { %327 = vmatpush.msra.mxu0 %v230_v46  ;;  %369 = vmatpush.msra.mxu2 %v265_v0  ;;  %v264_v22 = vld [vmem:[#allocation17 + $0x10] sm:$0xff]  ;;  %v263_v26 = vld [vmem:[#allocation17 + $0x8] sm:$0xff]  ;;  %v262_v30 = vld [vmem:[#allocation17] sm:$0xff] }
  0x54   :  { %347 = vmatpush.msra.mxu1 %v214_v47  ;;  %389 = vmatpush.msra.mxu3 %v249_v1  ;;  %v248_v23 = vld [vmem:[#allocation16 + $0x10] sm:$0xff]  ;;  %v247_v27 = vld [vmem:[#allocation16 + $0x8] sm:$0xff]  ;;  %v246_v31 = vld [vmem:[#allocation16] sm:$0xff] }
  0x55   :  { %328 = vmatpush.msra.mxu0 %v229_v48  ;;  %v297_v24 = vld [vmem:[#allocation20 + $0x10] sm:$0xff]  ;;  %370 = vmatpush.msra.mxu2 %v264_v22  ;;  %v296_v28 = vld [vmem:[#allocation20 + $0x8] sm:$0xff]  ;;  %v295_v32 = vld [vmem:[#allocation20] sm:$0xff] }
  0x56   :  { %348 = vmatpush.msra.mxu1 %v213_v51  ;;  %329 = vmatmul.f32.vlgmr.msra.gmra.mxu0 %v1156_v52  ;;  %v281_v25 = vld [vmem:[#allocation19 + $0x10] sm:$0xff]  ;;  %v280_v29 = vld [vmem:[#allocation19 + $0x8] sm:$0xff]  ;;  %v279_v33 = vld [vmem:[#allocation19] sm:$0xff] }
  0x57   :  { %349 = vmatmul.f32.vlgmr.msra.gmra.mxu1 %v312_v53  ;;  %420 = vmatpush.msrb.mxu0 %v310_v54  ;;  %v1159_v34 = vld [vmem:[#allocation8] sm:$0xff]  ;;  %v208_v35 = vld [vmem:[#allocation11] sm:$0xff]  ;;  %v611_v36 = vld [vmem:[%s1200_s6] ss:$0 sm:$0xff] }
  0x58   :  { %440 = vmatpush.msrb.mxu1 %v294_v55  ;;  %390 = vmatpush.msra.mxu3 %v248_v23  ;;  %v612_v42 = vld [vmem:[%s1206_s12] ss:$0 sm:$0xff]  ;;  %v1017_v23 = vmov 0.0  }
  0x59   :  { %421 = vmatpush.msrb.mxu0 %v309_v58  ;;  %371 = vmatpush.msra.mxu2 %v263_v26  ;;  %v613_v48 = vld [vmem:[%s1203_s9] ss:$0 sm:$0xff]  ;;  %s1012_s9 = smov [#allocation26]  }
  0x5a   :  { %441 = vmatpush.msrb.mxu1 %v293_v59  ;;  %391 = vmatpush.msra.mxu3 %v247_v27  ;;  %s544_s12 = sshll.u32 %s1012_s9, 4  ;;  %s545_s12 = int_to_ptr.vmem [resolvable:$true] %s544_s12 }
  0x5b   :  { %422 = vmatpush.msrb.mxu0 %v308_v62  ;;  %372 = vmatpush.msra.mxu2 %v262_v30 }
  0x5c   :  { %442 = vmatpush.msrb.mxu1 %v292_v63  ;;  %392 = vmatpush.msra.mxu3 %v246_v31 }
  0x5d   :  { %423 = vmatpush.msrb.mxu0 %v307_v2  ;;  %373 = vmatmul.f32.vlgmr.msra.gmra.mxu2 %v1159_v34 }
  0x5e   :  { %443 = vmatpush.msrb.mxu1 %v291_v3 }
  0x5f   :  { %424 = vmatpush.msrb.mxu0 %v306_v4 }
  0x60   :  { %444 = vmatpush.msrb.mxu1 %v290_v5 }
  0x61   :  { %425 = vmatpush.msrb.mxu0 %v305_v6 }
  0x62   :  { %445 = vmatpush.msrb.mxu1 %v289_v7 }
  0x63   :  { %426 = vmatpush.msrb.mxu0 %v304_v8 }
  0x64   :  { %446 = vmatpush.msrb.mxu1 %v288_v9 }
  0x65   :  { %427 = vmatpush.msrb.mxu0 %v303_v10 }
  0x66   :  { %447 = vmatpush.msrb.mxu1 %v287_v11 }
  0x67   :  { %428 = vmatpush.msrb.mxu0 %v302_v12 }
  0x68   :  { %448 = vmatpush.msrb.mxu1 %v286_v13 }
  0x69   :  { %429 = vmatpush.msrb.mxu0 %v301_v14 }
  0x6a   :  { %449 = vmatpush.msrb.mxu1 %v285_v15 }
  0x6b   :  { %430 = vmatpush.msrb.mxu0 %v300_v16 }
  0x6c   :  { %450 = vmatpush.msrb.mxu1 %v284_v17 }
  0x6d   :  { %431 = vmatpush.msrb.mxu0 %v299_v18 }
  0x6e   :  { %451 = vmatpush.msrb.mxu1 %v283_v19 }
  0x6f   :  { %432 = vmatpush.msrb.mxu0 %v298_v20 }
  0x70   :  { %452 = vmatpush.msrb.mxu1 %v282_v21 }
  0x71   :  { %433 = vmatpush.msrb.mxu0 %v297_v24 }
  0x72   :  { %453 = vmatpush.msrb.mxu1 %v281_v25 }
  0x73   :  { %434 = vmatpush.msrb.mxu0 %v296_v28 }
  0x74   :  { %454 = vmatpush.msrb.mxu1 %v280_v29 }
  0x75   :  { %435 = vmatpush.msrb.mxu0 %v295_v32 }
  0x76   :  { %455 = vmatpush.msrb.mxu1 %v279_v33  ;;  %436 = vmatmul.f32.vlgmr.msrb.gmra.mxu0 %v208_v35 }
  0xd3   :  { %v330_v37 = vpop.f32.mrf.mxu0 }
  0xd4   :  { %v350_v38 = vpop.f32.mrf.mxu1 }
  0xd5   :  { %v351_v39 = vadd.f32 %v350_v38, %v330_v37 }
  0xd7   :  { %v1165_v40 = vadd.f32 %v611_v36, %v351_v39 }
  0xd9   :  { %393 = vmatmul.f32.vlgmr.msra.gmra.mxu3 %v1165_v40  ;;  %456 = vmatmul.f32.vlgmr.msrb.gmra.mxu1 %v1165_v40  ;;  %v489_v15 = vsub.f32 %v1165_v40, %v1159_v34 }
  0xe0   :  { %v374_v46 = vpop.f32.mrf.mxu2 }
  0xf3   :  { %v437_v41 = vpop.f32.mrf.mxu0 }
 0x156   :  { %v457_v43 = vpop.f32.mrf.mxu1 }
 0x157   :  { %v458_v44 = vadd.f32 %v457_v43, %v437_v41 }
 0x159   :  { %v463_v45 = vadd.f32 %v612_v42, %v458_v44 }
 0x15b   :  { %v591_v47 = vmul.f32 -1.442695, %v463_v45 }
 0x15c   :  { %v394_v49 = vpop.f32.mrf.mxu3 }
 0x15d   :  { %614 = vpow2.f32 %v591_v47  ;;  %v395_v50 = vadd.f32 %v394_v49, %v374_v46 }
 0x15f   :  { %v400_v51 = vadd.f32 %v613_v48, %v395_v50 }
 0x161   :  { %v590_v53 = vmul.f32 -1.442695, %v400_v51 }
 0x163   :  { %v615_v54 = vpop.eup %614  ;;  %616 = vpow2.f32 %v590_v53 }
 0x164   :  { %v467_v55 = vadd.f32 1.0, %v615_v54 }
 0x166   :  { %618 = vrcp.f32 %v467_v55  ;;  %v479_v61 = vand.u32 2147483648, %v467_v55  ;;  %v477_v63 = vand.u32 2147483647, %v467_v55  ;;  %vm473_vm1 = vweird.f32 %v467_v55 }
 0x168   :  { %v480_v3 = vor.u32 1.1754944e-38, %v479_v61  ;;  %vm478_vm3 = vcmp.eq.f32.partialorder %v477_v63, 8.507059e+37 }
 0x169   :  { %v617_v56 = vpop.eup %616 }
 0x16a   :  { %v404_v57 = vadd.f32 1.0, %v617_v56 }
 0x16c   :  { %v619_v58 = vpop.eup %618  ;;  %620 = vrcp.f32 %v404_v57  ;;  %v416_v6 = vand.u32 2147483648, %v404_v57  ;;  %v414_v9 = vand.u32 2147483647, %v404_v57  ;;  %vm410_vm5 = vweird.f32 %v404_v57 }
 0x16d   :  { %v469_v59 = vmul.f32 %v619_v58, %v467_v55  ;;  %vm474_vm0 = vweird.f32 %v619_v58 }
 0x16e   :  { %vm475_vm2 = vmor %vm473_vm1, %vm474_vm0  ;;  %v417_v14 = vor.u32 1.1754944e-38, %v416_v6  ;;  %vm415_vm7 = vcmp.eq.f32.partialorder %v414_v9, 8.507059e+37 }
 0x16f   :  { %v470_v60 = vsub.f32 1.0, %v469_v59 }
 0x171   :  { %v471_v62 = vmul.f32 %v619_v58, %v470_v60 }
 0x172   :  { %v621_v0 = vpop.eup %620 }
 0x173   :  { %v406_v1 = vmul.f32 %v621_v0, %v404_v57  ;;  %v472_v2 = vadd.f32 %v619_v58, %v471_v62  ;;  %vm411_vm4 = vweird.f32 %v621_v0 }
 0x174   :  { %vm412_vm6 = vmor %vm410_vm5, %vm411_vm4 }
 0x175   :  { %v407_v4 = vsub.f32 1.0, %v406_v1  ;;  %v476_v5 = vsel %vm475_vm2, %v619_v58, %v472_v2 }
 0x176   :  { %v481_v7 = vsel %vm478_vm3, %v480_v3, %v476_v5 }
 0x177   :  { %v408_v8 = vmul.f32 %v621_v0, %v407_v4  ;;  %v484_v10 = vsub.f32 1.0, %v481_v7  ;;  %502 = vst [vmem:[#allocation28] sm:$0xff] %v481_v7  ;;  %v483_v12 = vmul.f32 %v481_v7, %v208_v35 }
 0x179   :  { %v409_v11 = vadd.f32 %v621_v0, %v408_v8  ;;  %v485_v13 = vmul.f32 %v484_v10, %v1156_v52 }
 0x17b   :  { %v413_v16 = vsel %vm412_vm6, %v621_v0, %v409_v11  ;;  %v486_v17 = vadd.f32 %v485_v13, %v483_v12 }
 0x17c   :  { %v418_v18 = vsel %vm415_vm7, %v417_v14, %v413_v16 }
 0x17d   :  { %v487_v52 = vmul.f32 1.8, %v486_v17  ;;  %v490_v19 = vmul.f32 %v489_v15, %v418_v18  ;;  %501 = vst [vmem:[#allocation26] sm:$0xff] %v418_v18 }
 0x17e   :  { %549 = dma.vmem_to_hbm [thread:$0]  %s545_s12, 128, %s547_s28, [#allocation27]  }
 0x17f   :  { %v488_v20 = vadd.f32 0.1, %v487_v52  ;;  %v491_v21 = vadd.f32 %v490_v19, %v1159_v34  ;;  %560 = dma.vmem_to_hbm [thread:$0]  %s556_s18, 128, %s558_s19, [#allocation27]  }
 0x181   :  { %v492_v22 = vsub.f32 %v491_v21, %v488_v20  ;;  %500 = vst [vmem:[#allocation25] sm:$0xff] %v488_v20 }
 0x183   :  { %vm493_vm8 = vcmp.gt.f32.partialorder %v492_v22, 0.0 }
 0x184   :  { %v592_v24 = vsel %vm493_vm8, 1.0, %v1017_v23 }
 0x185   :  { %v496_v25 = vsub.f32 1.0, %v592_v24  ;;  %499 = vst [vmem:[#allocation23] sm:$0xff] %v592_v24 }
 0x186   :  { %527 = dma.vmem_to_hbm [thread:$0]  %s523_s17, 128, %s525_s4, [#allocation24]  }
 0x187   :  { %v497_v26 = vmul.f32 %v496_v25, %v491_v21  ;;  %538 = dma.vmem_to_hbm [thread:$0]  %s534_s20, 128, %s536_s22, [#allocation24]  }
 0x189   :  { %498 = vst [vmem:[#allocation22] sm:$0xff] %v497_v26 }
 0x18a   :  { %516 = dma.vmem_to_hbm [thread:$0]  %s512_s10, 128, %s514_s3, [#allocation7]  }
 0x18b   :  { %994 = dma.done.wait [#allocation7], 128  }
 0x18c   :  { %995 = vsyncadd [#allocation7], 4294967168 }
 0x18d   :  { %996 = dma.done.wait [#allocation24], 256  }
 0x18e   :  { %997 = vsyncadd [#allocation24], 4294967040 }
 0x18f   :  { %998 = dma.done.wait [#allocation27], 256  }
 0x190   :  { %999 = vsyncadd [#allocation27], 4294967040 }
 0x191   :  { %581 = vsyncpa [#allocation6], 1 }
 0x192   :  { %582 = vsyncpa [#allocation9], 1 }
 0x193   :  { %583 = vsyncpa [#allocation12], 1 }
 0x194   :  { %584 = vsyncpa [#allocation15], 1 }
 0x195   :  { %585 = vsyncpa [#allocation18], 1 }
 0x196   :  { %586 = vsyncpa [#allocation21], 1 }
 0x197   :  { %587 = vsyncpa [#allocation7], 1 }
 0x198   :  { %588 = vsyncpa [#allocation24], 1 }
 0x199   :  { %589 = vsyncpa [#allocation27], 1 }

</bundles_post_ra>
